<compile_context>
chip_gen: v7x
topology: tpu7x:2x2x1
jax: 0.10.0
libtpu: 0.0.40
codegen_flags: <defaults>
</compile_context>

<pallas_src>
import functools

import jax
import jax.numpy as jnp
from jax.experimental import pallas as pl
from jax.experimental.pallas import tpu as pltpu


def _round_up(x, m):
    return ((x + m - 1) // m) * m


def _vmem_capacity_bytes():
    try:
        return int(pltpu.get_tpu_info().vmem_capacity_bytes)
    except Exception:
        return 64 << 20  # conservative default: v7x per-core VMEM


def _decoder_head_kernel(x_ref, ln_w_ref, w_ref, o_ref, *, eps):
    # x_ref:    (tm, D)  hidden-state row tile
    # ln_w_ref: (1, D)   f32 layernorm weight (tie_word_embeddings scale folded in)
    # w_ref:    (tn, D)  lm_head weight tile, torch (V, D) layout (never transposed)
    # o_ref:    (tm, tn) logits tile
    #
    # The RMS norm is recomputed each grid step: it is tm*D VPU/EUP work (<1% of
    # the tm*tn*D MXU matmul at realistic tn) and dropping the hoisted-norm
    # scratch removes every cross-step dependence, so both grid axes can be
    # marked "parallel" (v7x megacore shards the vocab axis even for decode).
    x = x_ref[...].astype(jnp.float32)
    var = jnp.mean(x * x, axis=-1, keepdims=True)
    xn = x * jax.lax.rsqrt(var + eps) * ln_w_ref[...]
    if jnp.issubdtype(w_ref.dtype, jnp.floating):
        xn = xn.astype(w_ref.dtype)  # single cast, right before the MXU
    # Transposed-RHS contraction: (tm, D) x (tn, D) over dim 1 of both -> (tm, tn).
    # The torch (V, D) layout is consumed directly; no (D, V) transpose is ever
    # materialized.
    # TODO(synk): confirm via pl.lower_as_mlir that Mosaic emits no per-step
    # vxpose of the weight tile on v5e.
    o_ref[...] = jax.lax.dot_general(
        xn, w_ref[...],
        dimension_numbers=(((1,), (1,)), ((), ())),
        preferred_element_type=jnp.float32,
    ).astype(o_ref.dtype)


def _select_tiles(M, V, D, x_bytes, w_bytes, o_bytes, sub_m, budget_bytes):
    """Pick (tm, tn) so the double-buffered working set fits `budget_bytes`."""
    # Row tile: large enough to amortize per-step overhead / operand re-streaming;
    # bigger cap on big-VMEM generations (v5e/v6e: 128 MiB physical VMEM).
    cap_m = 512 if budget_bytes >= (56 << 20) else 256
    tm = min(cap_m, _round_up(M, sub_m))
    # Fixed VMEM: double-buffered x tile + resident layernorm weight.
    fixed = 2 * tm * D * x_bytes + 2 * D * 4
    avail = max(budget_bytes - fixed, 1 << 20)
    # Per unit of tn: double-buffered weight tile + double-buffered output tile.
    # Weight-dtype aware: f32 weights get a smaller tn than bf16/int8 weights.
    per_tn = 2 * D * w_bytes + 2 * tm * o_bytes
    tn = (avail // per_tn) // 128 * 128
    tn = int(min(max(tn, 128), 8192))
    return int(tm), tn


def decoder_layer_head(hidden_states, ln_weight, lm_head_weight, *, eps=1e-6,
                       tie_word_embeddings=True, tm=None, tn=None, mode="auto",
                       out_dtype=None):
    """Fused T5 final_layer_norm (+ optional d_model**-0.5 scale) + lm_head.

    hidden_states: (B, S, D); ln_weight: (D,); lm_head_weight: (V, D) torch layout.
    Dropout is identity in eval/inference mode, so it is omitted.
    """
    B, S, D = hidden_states.shape
    V, D2 = lm_head_weight.shape
    assert D2 == D
    M = B * S
    out_dtype = hidden_states.dtype if out_dtype is None else out_dtype

    x2d = hidden_states.reshape(M, D)

    # Fold the tie_word_embeddings scale into the tiny, VMEM-resident layernorm
    # weight: one less full-tile VPU multiply per grid step.
    scale = float(D) ** (-0.5) if tie_word_embeddings else 1.0
    ln_w = (ln_weight.astype(jnp.float32) * scale).reshape(1, D)

    x_bytes = jnp.dtype(hidden_states.dtype).itemsize
    w_bytes = jnp.dtype(lm_head_weight.dtype).itemsize
    o_bytes = jnp.dtype(out_dtype).itemsize
    # dtype-aware sublane multiple: 8 (f32), 16 (bf16), 32 (int8/fp8).
    sub_m = max(8, 32 // x_bytes)

    vmem_cap = _vmem_capacity_bytes()
    tile_budget = int(vmem_cap * 0.55)               # headroom for compiler scratch
    vmem_limit = int(min(vmem_cap * 0.85, 100 << 20))

    tm_sel, tn_sel = _select_tiles(M, V, D, x_bytes, w_bytes, o_bytes, sub_m,
                                   tile_budget)
    tm = tm_sel if tm is None else tm
    tn = tn_sel if tn is None else tn

    # ---- rows: pad only the (small) activations up to the sublane multiple; the
    # huge (V, D) lm_head weight is never padded or copied. ----
    M_pad = _round_up(M, sub_m)
    if M_pad != M:
        x2d = jnp.pad(x2d, ((0, M_pad - M), (0, 0)))
    tm = max(sub_m, (min(tm, M_pad) // sub_m) * sub_m)
    while M_pad % tm:            # keep tm an exact divisor of M_pad -> zero wasted
        tm -= sub_m              # MXU work / logits writes on padded row tiles

    # ---- vocab tile: prefer a single full-dim tile (legal for any V), else the
    # largest 128-multiple <= tn that divides V; only otherwise keep a ragged last
    # tile (its out-of-range columns are never written back). ----
    if tn >= V:
        tn = V
    else:
        tn = max(128, (tn // 128) * 128)
        if V % tn:
            t = tn
            while t >= 128 and V % t:
                t -= 128
            if t >= max(128, tn // 2):
                tn = t
            # TODO(synk): for vocab sizes with no good 128-multiple divisor,
            # pre-pad the lm_head weight once outside the step instead of using
            # a ragged edge tile.

    n_i = pl.cdiv(M_pad, tm)
    n_j = pl.cdiv(V, tn)

    # ---- choose which operand is re-streamed over HBM ----
    #   weight_streamed (decode):  x resident per row tile, weight fetched n_i times.
    #   rows_streamed   (prefill): weight resident per vocab tile, x fetched n_j times.
    if mode == "auto":
        w_extra = (n_i - 1) * V * D * w_bytes        # extra weight traffic (mode A)
        x_extra = (n_j - 1) * M_pad * D * x_bytes    # extra activation traffic (mode B)
        mode = "weight_streamed" if w_extra <= x_extra else "rows_streamed"

    if mode == "weight_streamed":
        grid = (n_i, n_j)                            # vocab is the inner axis
        in_specs = [pl.BlockSpec((tm, D), lambda i, j: (i, 0)),
                    pl.BlockSpec((1, D), lambda i, j: (0, 0)),
                    pl.BlockSpec((tn, D), lambda i, j: (j, 0))]
        out_spec = pl.BlockSpec((tm, tn), lambda i, j: (i, j))
    elif mode == "rows_streamed":
        grid = (n_j, n_i)                            # rows are the inner axis
        in_specs = [pl.BlockSpec((tm, D), lambda j, i: (i, 0)),
                    pl.BlockSpec((1, D), lambda j, i: (0, 0)),
                    pl.BlockSpec((tn, D), lambda j, i: (j, 0))]
        out_spec = pl.BlockSpec((tm, tn), lambda j, i: (i, j))
    else:
        raise ValueError(f"unknown mode: {mode}")

    flops = 2 * M_pad * D * (n_j * tn)
    if mode == "weight_streamed":
        bytes_accessed = (M_pad * D * x_bytes + n_i * V * D * w_bytes
                          + M_pad * V * o_bytes)
    else:
        bytes_accessed = (n_j * M_pad * D * x_bytes + V * D * w_bytes
                          + M_pad * V * o_bytes)
    cost = pl.CostEstimate(flops=int(flops), transcendentals=int(n_i * n_j * tm),
                           bytes_accessed=int(bytes_accessed))

    kernel = functools.partial(_decoder_head_kernel, eps=eps)

    out = pl.pallas_call(
        kernel,
        out_shape=jax.ShapeDtypeStruct((M_pad, V), out_dtype),
        grid_spec=pltpu.PrefetchScalarGridSpec(
            num_scalar_prefetch=0,
            grid=grid,
            in_specs=in_specs,
            out_specs=out_spec,
        ),
        compiler_params=pltpu.CompilerParams(
            # No cross-step dependence (norm recomputed per step), so both axes
            # are parallel; v7x megacore can shard the vocab axis across its two
            # TensorCores even for single-row-tile decode shapes.
            dimension_semantics=("parallel", "parallel"),
            vmem_limit_bytes=vmem_limit,
        ),
        cost_estimate=cost,
    )(x2d, ln_w, lm_head_weight)

    if M_pad != M:
        out = out[:M]
    return out.reshape(B, S, V)


def reference(hidden_states, ln_weight, lm_head_weight, *, eps=1e-6,
              tie_word_embeddings=True):
    x = hidden_states.astype(jnp.float32)
    var = jnp.mean(x * x, axis=-1, keepdims=True)
    x = x * jax.lax.rsqrt(var + eps)
    x = x * ln_weight.astype(jnp.float32)
    if tie_word_embeddings:
        x = x * (hidden_states.shape[-1] ** (-0.5))
    return x @ lm_head_weight.T.astype(jnp.float32)


if __name__ == "__main__":
    key = jax.random.PRNGKey(0)
    k1, k2, k3, k4 = jax.random.split(key, 4)

    # Config 1: decode-like shape with a vocab that is NOT a multiple of 128
    # (handled as one full-dim vocab tile — no weight padding anywhere).
    B, S, D, V = 2, 8, 32, 320
    hidden = jax.random.normal(k1, (B, S, D), dtype=jnp.float32)
    ln_w = jnp.ones((D,), jnp.float32) + 0.01 * jax.random.normal(k2, (D,))
    w1 = 0.05 * jax.random.normal(k3, (V, D), dtype=jnp.float32)

    ref1 = reference(hidden, ln_w, w1)
    out1 = jax.block_until_ready(decoder_layer_head(hidden, ln_w, w1))
    assert out1.shape == (B, S, V)
    assert jnp.allclose(out1, ref1, atol=1e-4, rtol=1e-4), (
        float(jnp.max(jnp.abs(out1 - ref1))))

    # Config 2: multi-tile grid with explicit small tiles; auto mode picks the
    # rows-streamed (prefill-style) order -> weight resident per vocab tile.
    V2 = 512
    w2 = 0.05 * jax.random.normal(k4, (V2, D), dtype=jnp.float32)
    ref2 = reference(hidden, ln_w, w2)
    out2 = jax.block_until_ready(
        decoder_layer_head(hidden, ln_w, w2, tm=8, tn=128))
    assert out2.shape == (B, S, V2)
    assert jnp.allclose(out2, ref2, atol=1e-4, rtol=1e-4), (
        float(jnp.max(jnp.abs(out2 - ref2))))

    # Config 3: same inputs, forced weight-streamed (decode-style) grid order.
    out3 = jax.block_until_ready(
        decoder_layer_head(hidden, ln_w, w2, tm=8, tn=128,
                           mode="weight_streamed"))
    assert jnp.allclose(out3, ref2, atol=1e-4, rtol=1e-4), (
        float(jnp.max(jnp.abs(out3 - ref2))))

    # Config 4: bf16 activations + bf16 lm_head weight (dtype-aware tiling and
    # the in-kernel f32->bf16 cast before the MXU).
    hidden_bf16 = hidden.astype(jnp.bfloat16)
    w2_bf16 = w2.astype(jnp.bfloat16)
    ref4 = reference(hidden_bf16, ln_w, w2_bf16)
    out4 = jax.block_until_ready(decoder_layer_head(hidden_bf16, ln_w, w2_bf16))
    assert out4.shape == (B, S, V2)
    assert jnp.allclose(out4.astype(jnp.float32), ref4, atol=5e-2, rtol=5e-2), (
        float(jnp.max(jnp.abs(out4.astype(jnp.float32) - ref4))))

    print("KERNEL_OK")
</pallas_src>

<mosaic_0001>
module attributes {stable_mosaic.version = 11 : i64} {
  func.func @_decoder_head_kernel(%arg0: i32, %arg1: i32, %arg2: memref<16x32xf32, #tpu.memory_space<vmem>>, %arg3: memref<1x32xf32, #tpu.memory_space<vmem>>, %arg4: memref<320x32xf32, #tpu.memory_space<vmem>>, %arg5: memref<16x320xf32, #tpu.memory_space<vmem>>) attributes {dimension_semantics = [#tpu.dimension_semantics<parallel>, #tpu.dimension_semantics<parallel>], iteration_bounds = array<i64: 1, 1>, scalar_prefetch = 0 : i64, scratch_operands = 0 : i64, tpu.core_type = #tpu.core_type<tc>, window_params = [{transform_indices = @transform_0, window_bounds = array<i64: 16, 32>}, {pipeline_mode = #tpu.pipeline_mode<synchronous>, transform_indices = @transform_1, window_bounds = array<i64: 1, 32>}, {transform_indices = @transform_2, window_bounds = array<i64: 320, 32>}, {transform_indices = @transform_3, window_bounds = array<i64: 16, 320>}]} {
    %c0 = arith.constant 0 : index
    %c0_0 = arith.constant 0 : index
    %0 = vector.load %arg2[%c0, %c0_0] : memref<16x32xf32, #tpu.memory_space<vmem>>, vector<16x32xf32>
    %1 = arith.mulf %0, %0 : vector<16x32xf32>
    %cst = arith.constant dense<0.000000e+00> : vector<16xf32>
    %2 = vector.multi_reduction <add>, %1, %cst [1] : vector<16x32xf32> to vector<16xf32>
    %3 = vector.shape_cast %2 : vector<16xf32> to vector<16x1xf32>
    %cst_1 = arith.constant 3.200000e+01 : f32
    %4 = vector.broadcast %cst_1 : f32 to vector<16x1xf32>
    %5 = arith.divf %3, %4 : vector<16x1xf32>
    %cst_2 = arith.constant 9.99999997E-7 : f32
    %6 = vector.broadcast %cst_2 : f32 to vector<16x1xf32>
    %7 = arith.addf %5, %6 : vector<16x1xf32>
    %8 = math.rsqrt %7 : vector<16x1xf32>
    %9 = vector.broadcast %8 : vector<16x1xf32> to vector<16x32xf32>
    %10 = arith.mulf %0, %9 : vector<16x32xf32>
    %c0_3 = arith.constant 0 : index
    %c0_4 = arith.constant 0 : index
    %11 = vector.load %arg3[%c0_3, %c0_4] : memref<1x32xf32, #tpu.memory_space<vmem>>, vector<1x32xf32>
    %12 = vector.broadcast %11 : vector<1x32xf32> to vector<16x32xf32>
    %13 = arith.mulf %10, %12 : vector<16x32xf32>
    %c0_5 = arith.constant 0 : index
    %c0_6 = arith.constant 0 : index
    %14 = vector.load %arg4[%c0_5, %c0_6] : memref<320x32xf32, #tpu.memory_space<vmem>>, vector<320x32xf32>
    %cst_7 = arith.constant dense<0.000000e+00> : vector<16x320xf32>
    %15 = tpu.matmul %13, %14, %cst_7 {dimension_numbers = #tpu.dot_dimension_numbers<[1], [1], [0], [0], [0, 0, 1, 0], [], []>} : vector<16x32xf32>, vector<320x32xf32>, vector<16x320xf32> -> vector<16x320xf32>
    %c0_8 = arith.constant 0 : index
    %c0_9 = arith.constant 0 : index
    %16 = vector.load %arg5[%c0_8, %c0_9] : memref<16x320xf32, #tpu.memory_space<vmem>>, vector<16x320xf32>
    tpu.vector_store %arg5[%c0_8, %c0_9], %15 {strides = array<i32>} : memref<16x320xf32, #tpu.memory_space<vmem>>, vector<16x320xf32>,
    return
  }
  func.func @transform_0(%arg0: i32, %arg1: i32) -> (i32, i32) {
    %c0_i32 = arith.constant 0 : i32
    %c0_i32_0 = arith.constant 0 : i32
    return %arg0, %c0_i32 : i32, i32
  }
  func.func @transform_1(%arg0: i32, %arg1: i32) -> (i32, i32) {
    %c0_i32 = arith.constant 0 : i32
    %c0_i32_0 = arith.constant 0 : i32
    %c0_i32_1 = arith.constant 0 : i32
    return %c0_i32, %c0_i32_0 : i32, i32
  }
  func.func @transform_2(%arg0: i32, %arg1: i32) -> (i32, i32) {
    %c0_i32 = arith.constant 0 : i32
    %c0_i32_0 = arith.constant 0 : i32
    return %arg1, %c0_i32 : i32, i32
  }
  func.func @transform_3(%arg0: i32, %arg1: i32) -> (i32, i32) {
    %c0_i32 = arith.constant 0 : i32
    return %arg0, %arg1 : i32, i32
  }
}

</mosaic_0001>

<bundles_post_ra>
// kernel: tpu_custom_call.1
= control target key start
LH: loop header
LB: loop body
LE: loop exit
PB: predicated region body
PF: predicated region fallthrough
CT: control target
= control target key end

     0   :  { %vm19_vm0 = vcmask 261120   ;;  %s834_s0 = inlined_call_operand.vmem [shape: f32[16,32], index: 0, kind: input, shape index: {}]   ;;  %s835_s1 = inlined_call_operand.vmem [shape: f32[1,32], index: 1, kind: input, shape index: {}]   ;;  %s836_s2 = inlined_call_operand.vmem [shape: f32[320,32], index: 2, kind: input, shape index: {}]   ;;  %s837_s3 = inlined_call_operand.hbm [shape: f32[16,320], index: 3, kind: output, shape index: {}]  }
   0x1   :  { %v624_v0 = vld [vmem:[%s834_s0] sm:$0xff]  ;;  %v629_v1 = vld [vmem:[%s834_s0 + $0x8] sm:$0xff]  ;;  %vm638_vm1 = vmpackc.low %vm19_vm0, %vm19_vm0 }
   0x2   :  { %v60_v2 = vld [vmem:[%s836_s2 + $0x80] sm:$0xff]  ;;  %v17_v3 = vmul.f32 %v624_v0, %v624_v0  ;;  %v18_v5 = vmul.f32 %v629_v1, %v629_v1  ;;  %v61_v6 = vld [vmem:[%s836_s2 + $0x88] sm:$0xff]  ;;  %v62_v10 = vld [vmem:[%s836_s2 + $0x90] sm:$0xff] }
   0x3   :  { %v44_v7 = vld [vmem:[%s836_s2] sm:$0xff]  ;;  %v495_v8 = vpack.c.bf16 %v61_v6, %v60_v2  ;;  %v45_v9 = vld [vmem:[%s836_s2 + $0x8] sm:$0xff]  ;;  %v63_v11 = vld [vmem:[%s836_s2 + $0x98] sm:$0xff] }
   0x4   :  { %v20_v12 = vsel %vm19_vm0, %v17_v3, 0.0  ;;  %v498_v13 = vpack.c.bf16 %v45_v9, %v44_v7  ;;  %v501_v14 = vpack.c.bf16 %v63_v11, %v62_v10  ;;  %v23_v15 = vsel %vm19_vm0, %v18_v5, 0.0  ;;  %v46_v16 = vld [vmem:[%s836_s2 + $0x10] sm:$0xff]  ;;  %v47_v17 = vld [vmem:[%s836_s2 + $0x18] sm:$0xff]  ;;  %v64_v18 = vld [vmem:[%s836_s2 + $0xa0] sm:$0xff] }
   0x5   :  { %21 = vadd.xlane.f32.xlu0 %v20_v12  ;;  %497 = vmatprep.subr.msk.bf16.mxu0 %vm638_vm1, %v495_v8  ;;  %v65_v19 = vld [vmem:[%s836_s2 + $0xa8] sm:$0xff]  ;;  %v76_v20 = vld [vmem:[%s836_s2 + $0x100] sm:$0xff]  ;;  %v504_v22 = vpack.c.bf16 %v47_v17, %v46_v16  ;;  %v78_v24 = vld [vmem:[%s836_s2 + $0x110] sm:$0xff] }
   0x6   :  { %500 = vmatpush3.bf16.xpose.msk.msra.mxu0 %vm638_vm1, %v498_v13  ;;  %v77_v21 = vld [vmem:[%s836_s2 + $0x108] sm:$0xff]  ;;  %v507_v25 = vpack.c.bf16 %v65_v19, %v64_v18  ;;  %v79_v26 = vld [vmem:[%s836_s2 + $0x118] sm:$0xff] }
   0x7   :  { %503 = vmatprep.subr.msk.bf16.mxu0 %vm638_vm1, %v501_v14  ;;  %v543_v23 = vpack.c.bf16 %v77_v21, %v76_v20 }
   0x9   :  { %24 = vadd.xlane.f32.xlu0 %v23_v15 }
   0xa   :  { %8 = vsyncpa [#allocation3], 0  ;;  %545 = vmatprep.subr.msk.bf16.mxu1 %vm638_vm1, %v543_v23  ;;  %v549_v27 = vpack.c.bf16 %v79_v26, %v78_v24  ;;  %v48_v28 = vld [vmem:[%s836_s2 + $0x20] sm:$0xff]  ;;  %v49_v29 = vld [vmem:[%s836_s2 + $0x28] sm:$0xff]  ;;  %vm364_vm2 = vcmask 523264  }
   0xb   :  { %548 = vmatpush3.bf16.xpose.msk.msra.mxu1 %vm638_vm1, %v543_v23  ;;  %v66_v30 = vld [vmem:[%s836_s2 + $0xb0] sm:$0xff]  ;;  %v67_v31 = vld [vmem:[%s836_s2 + $0xb8] sm:$0xff]  ;;  %v510_v32 = vpack.c.bf16 %v49_v29, %v48_v28  ;;  %v80_v36 = vld [vmem:[%s836_s2 + $0x120] sm:$0xff] }
   0xc   :  { %551 = vmatprep.subr.msk.bf16.mxu1 %vm638_vm1, %v549_v27  ;;  %v513_v33 = vpack.c.bf16 %v67_v31, %v66_v30  ;;  %v50_v34 = vld [vmem:[%s836_s2 + $0x30] sm:$0xff]  ;;  %v51_v35 = vld [vmem:[%s836_s2 + $0x38] sm:$0xff]  ;;  %v81_v37 = vld [vmem:[%s836_s2 + $0x128] sm:$0xff] }
   0xd   :  { %v68_v38 = vld [vmem:[%s836_s2 + $0xc0] sm:$0xff]  ;;  %v69_v39 = vld [vmem:[%s836_s2 + $0xc8] sm:$0xff]  ;;  %v555_v40 = vpack.c.bf16 %v81_v37, %v80_v36  ;;  %v516_v41 = vpack.c.bf16 %v51_v35, %v50_v34  ;;  %v82_v43 = vld [vmem:[%s836_s2 + $0x130] sm:$0xff] }
   0xe   :  { %506 = vmatpush3.bf16.xpose.msk.msra.mxu0 %vm638_vm1, %v504_v22  ;;  %v519_v42 = vpack.c.bf16 %v69_v39, %v68_v38  ;;  %v83_v44 = vld [vmem:[%s836_s2 + $0x138] sm:$0xff]  ;;  %v52_v46 = vld [vmem:[%s836_s2 + $0x40] sm:$0xff]  ;;  %v53_v47 = vld [vmem:[%s836_s2 + $0x48] sm:$0xff] }
   0xf   :  { %509 = vmatprep.subr.msk.bf16.mxu0 %vm638_vm1, %v507_v25  ;;  %v561_v45 = vpack.c.bf16 %v83_v44, %v82_v43  ;;  %v70_v48 = vld [vmem:[%s836_s2 + $0xd0] sm:$0xff]  ;;  %v71_v49 = vld [vmem:[%s836_s2 + $0xd8] sm:$0xff]  ;;  %v522_v50 = vpack.c.bf16 %v53_v47, %v52_v46  ;;  %v72_v54 = vld [vmem:[%s836_s2 + $0xe0] sm:$0xff] }
  0x10   :  { %v525_v51 = vpack.c.bf16 %v71_v49, %v70_v48  ;;  %v54_v52 = vld [vmem:[%s836_s2 + $0x50] sm:$0xff]  ;;  %v55_v53 = vld [vmem:[%s836_s2 + $0x58] sm:$0xff]  ;;  %v73_v55 = vld [vmem:[%s836_s2 + $0xe8] sm:$0xff] }
  0x11   :  { %v528_v56 = vpack.c.bf16 %v55_v53, %v54_v52  ;;  %v531_v57 = vpack.c.bf16 %v73_v55, %v72_v54  ;;  %v56_v58 = vld [vmem:[%s836_s2 + $0x60] sm:$0xff]  ;;  %v57_v59 = vld [vmem:[%s836_s2 + $0x68] sm:$0xff]  ;;  %v74_v60 = vld [vmem:[%s836_s2 + $0xf0] sm:$0xff] }
  0x12   :  { %v75_v61 = vld [vmem:[%s836_s2 + $0xf8] sm:$0xff]  ;;  %v534_v62 = vpack.c.bf16 %v57_v59, %v56_v58  ;;  %v58_v2 = vld [vmem:[%s836_s2 + $0x70] sm:$0xff]  ;;  %v385_v13 = vld [vmem:[%s835_s1] ss:$0 sm:$0xff]  ;;  %s598_s1 = smov [#allocation2]  }
  0x13   :  { %554 = vmatpush3.bf16.xpose.msk.msra.mxu1 %vm638_vm1, %v549_v27  ;;  %v537_v63 = vpack.c.bf16 %v75_v61, %v74_v60  ;;  %v59_v3 = vld [vmem:[%s836_s2 + $0x78] sm:$0xff]  ;;  %s374_s2 = sshll.u32 %s598_s1, 4  ;;  %s375_s2 = int_to_ptr.vmem [resolvable:$true] %s374_s2 }
  0x14   :  { %557 = vmatprep.subr.msk.bf16.mxu1 %vm638_vm1, %v555_v40  ;;  %v540_v5 = vpack.c.bf16 %v59_v3, %v58_v2  ;;  %s574_s14 = scalar_lea.vmem %s375_s2, 768  ;;  %p579_p1 = scmp.lt.s32.totalorder %s375_s2, %s375_s2 }
  0x15   :  { %p575_p0 = scmp.ne.s32.totalorder %s375_s2, %s574_s14  ;;  %p580_p2 = scmp.lt.s32.totalorder %s574_s14, %s574_s14 }
  0x16   :  { %512 = vmatpush3.bf16.xpose.msk.msra.mxu0 %vm638_vm1, %v510_v32 }
  0x17   :  { %515 = vmatprep.subr.msk.bf16.mxu0 %vm638_vm1, %v513_v33  ;;  %p581_p3 = por %p580_p2, %p579_p1 }
  0x19   :  { %p582_p4 = pnand %p581_p3, %p575_p0 }
  0x1b   :  { %560 = vmatpush3.bf16.xpose.msk.msra.mxu1 %vm638_vm1, %v555_v40 }
  0x1c   :  { %563 = vmatprep.subr.msk.bf16.mxu1 %vm638_vm1, %v561_v45 }
  0x1e   :  { %518 = vmatpush3.bf16.xpose.msk.msra.mxu0 %vm638_vm1, %v516_v41 }
  0x1f   :  { %521 = vmatprep.subr.msk.bf16.mxu0 %vm638_vm1, %v519_v42 }
  0x23   :  { %566 = vmatpush3.bf16.xpose.msk.msra.mxu1 %vm638_vm1, %v561_v45 }
  0x26   :  { %524 = vmatpush3.bf16.xpose.msk.msra.mxu0 %vm638_vm1, %v522_v50 }
  0x27   :  { %527 = vmatprep.subr.msk.bf16.mxu0 %vm638_vm1, %v525_v51 }
  0x2e   :  { %530 = vmatpush3.bf16.xpose.msk.msra.mxu0 %vm638_vm1, %v528_v56 }
  0x2f   :  { %533 = vmatprep.subr.msk.bf16.mxu0 %vm638_vm1, %v531_v57 }
  0x36   :  { %536 = vmatpush3.bf16.xpose.msk.msra.mxu0 %vm638_vm1, %v534_v62 }
  0x37   :  { %539 = vmatprep.subr.msk.bf16.mxu0 %vm638_vm1, %v537_v63 }
  0x3e   :  { %542 = vmatpush3.bf16.xpose.msk.msra.mxu0 %vm638_vm1, %v540_v5 }
  0x92   :  { %v22_v6 = vpop.xlane.xlu0 %21 }
  0x93   :  { %v27_v7 = vmul.f32 0.03125, %v22_v6 }
  0x95   :  { %v29_v8 = vadd.f32 1e-06, %v27_v7 }
  0x96   :  { %v25_v9 = vpop.xlane.xlu0 %24 }
  0x97   :  { %570 = vrsqrt.f32 %v29_v8  ;;  %v28_v10 = vmul.f32 0.03125, %v25_v9 }
  0x99   :  { %v30_v11 = vadd.f32 1e-06, %v28_v10 }
  0x9b   :  { %572 = vrsqrt.f32 %v30_v11 }
  0xa1   :  { %v571_v12 = vpop.eup %570 }
  0xa2   :  { %v33_v14 = vmul.f32 %v571_v12, %v624_v0 }
  0xa4   :  { %v42_v15 = vmul.f32 %v385_v13, %v33_v14 }
  0xa5   :  { %v573_v16 = vpop.eup %572 }
  0xa6   :  { %v34_v4 = vmul.f32 %v573_v16, %v629_v1  ;;  %462 = vmatprep.mubr.msk.f32.mxu0 %vm19_vm0, %v42_v15  ;;  %492 = vmatprep.mubr.msk.f32.mxu1 %vm19_vm0, %v42_v15 }
  0xa7   :  { %463 = vmatmul.mubr.msk.f32.vlgmr.msra.gmra.mrb[0].mxu0 %vm19_vm0, %v42_v15 }
  0xa8   :  { %v43_v17 = vmul.f32 %v385_v13, %v34_v4 }
  0xaa   :  { %464 = vmatprep.mubr.msk.f32.mxu0 %vm19_vm0, %v43_v17  ;;  %493 = vmatmul.mubr.msk.f32.vlgmr.msra.gmra.mrb[0].mxu1 %vm19_vm0, %v43_v17 }
  0xab   :  { %465 = vmatmul.mubr.msk.f32.gmra.mrb[2].mxu0 %vm19_vm0, %v43_v17 }
 0x17a   :  { %v276_v18 = vpop.f32.mrb[0].mxu0 }
 0x17b   :  { %362 = vst [vmem:[#allocation2] sm:$0xff] %v276_v18  ;;  %v278_v0 = vpop.f32.mrb[1].mxu0 }
 0x17c   :  { %363 = vst [vmem:[#allocation2 + $0x8] sm:$0xff] %v278_v0 }
 0x17d   :  { %v494_v1 = vpop.f32.mrb[0].mxu1 }
 0x17e   :  { %368 = vst.msk [vmem:[#allocation2 + $0x28] sm:$0xff] %vm364_vm2, %v494_v1  ;;  %v282_v19 = vpop.f32.mrb[2].mxu0  ;;  %v353_v20 = vpop.f32.mrb[1].mxu1 }
 0x17f   :  { %366 = vst [vmem:[#allocation2 + $0x18] sm:$0xff] %v282_v19  ;;  %365 = vst.msk [vmem:[#allocation2 + $0x10] sm:$0xff] %vm364_vm2, %v353_v20  ;;  %v284_v21 = vpop.f32.mrb[3].mxu0 }
 0x180   :  { %367 = vst [vmem:[#allocation2 + $0x20] sm:$0xff] %v284_v21 }
 0x181   :  { %585 = shalt.err (!%p582_p4)
}
 0x182   :  { %s586_s17 = scalar_lea.hbm %s837_s3, 768 }
 0x183   :  { %p587_p5 = scmp.ne.s32.totalorder %s837_s3, %s586_s17  ;;  %p590_p6 = scmp.lt.u32.totalorder %s586_s17, %s837_s3 }
 0x185   :  { %p592_p7 = pnand %p590_p6, %p587_p5 }
 0x187   :  { %595 = shalt.err (!%p592_p7)
}
 0x188   :  { %s599_s21 = smov 384   ;;  %s600_s22 = smov 24  }
 0x189   :  { %380 = dma.vmem_to_hbm [thread:$0]  %s375_s2, 768, %s837_s3, [#allocation3], %s599_s21, %s599_s21, %s600_s22  }
 0x18a   :  { %596 = dma.done.wait [#allocation3], 768  }
 0x18b   :  { %597 = vsyncadd [#allocation3], 4294966528 }
 0x18c   :  { %384 = vsyncpa [#allocation3], 1 }

</bundles_post_ra>
